<compile_context>
chip_gen: v7x
topology: tpu7x:2x2x1
jax: 0.10.0
libtpu: 0.0.40
codegen_flags: <defaults>
</compile_context>

<pallas_src>
import functools

import jax
import jax.numpy as jnp
import numpy as np
from jax.experimental import pallas as pl
from jax.experimental.pallas import tpu as pltpu

LANE = 128


# ------------------------------ tiling helpers ------------------------------

def _round_up(x, m):
    return (x + m - 1) // m * m


def _choose_m_tiling(m, cap=512):
    """Pick (tm, M_padded): tm multiple of 8, <= cap, >=2 tiles when possible (megacore)."""
    if m <= 8:
        return 8, 8
    mp = _round_up(m, 16)
    tm = max(8, (min(cap, mp // 2) // 8) * 8)
    mp = _round_up(mp, tm)
    return tm, mp


def _pad_cols(m2d, n=LANE):
    pad = (-m2d.shape[1]) % n
    return jnp.pad(m2d, ((0, 0), (0, pad))) if pad else m2d


# ------------------------------ Pallas kernel -------------------------------

def _fused_mm_kernel(*refs, pre_act, post_act, has_affine, slope):
    """out = post_act( pre_act( affine(A) ) @ W + bias ). Full K resident, one store."""
    if has_affine:
        a_ref, w_ref, b_ref, sc_ref, sh_ref, o_ref = refs
    else:
        a_ref, w_ref, b_ref, o_ref = refs

    a = a_ref[...]
    if has_affine:                                   # fused BatchNorm normalize (per column)
        a = a.astype(jnp.float32) * sc_ref[...] + sh_ref[...]
    if pre_act == "leaky":
        a = jnp.where(a >= 0, a, slope * a)
    elif pre_act == "relu":
        a = jnp.maximum(a, 0)
    a = a.astype(w_ref.dtype)

    acc = jnp.dot(a, w_ref[...], preferred_element_type=jnp.float32)
    acc = acc + b_ref[...]

    if post_act == "relu":
        acc = jnp.maximum(acc, 0.0)
    elif post_act == "tanh":
        acc = jnp.tanh(acc)
    o_ref[...] = acc.astype(o_ref.dtype)


def fused_mm(a, w, bias, *, pre_scale=None, pre_shift=None, pre_act=None, post_act=None,
             out_dtype=jnp.bfloat16, slope=0.2, tm_cap=512):
    """(M,K)bf16 @ (K,Nout)bf16 + bias; fused per-column affine / activations; lane-dense out."""
    M, K = a.shape
    Kw, Nout = w.shape
    assert K == Kw and Nout % LANE == 0
    has_affine = pre_scale is not None
    if has_affine:
        assert pre_shift is not None

    tm, Mp = _choose_m_tiling(M, tm_cap)
    if Mp != M:
        a = jnp.pad(a, ((0, Mp - M), (0, 0)))
    nm = Mp // tm

    kern = functools.partial(_fused_mm_kernel, pre_act=pre_act, post_act=post_act,
                             has_affine=has_affine, slope=slope)

    in_specs = [pl.BlockSpec((tm, K), lambda m: (m, 0)),       # streamed A tile
                pl.BlockSpec((K, Nout), lambda m: (0, 0)),     # resident weights
                pl.BlockSpec((1, Nout), lambda m: (0, 0))]     # resident bias
    operands = [a, w, bias]
    if has_affine:
        in_specs += [pl.BlockSpec((1, K), lambda m: (0, 0)),
                     pl.BlockSpec((1, K), lambda m: (0, 0))]
        operands += [pre_scale, pre_shift]

    out = pl.pallas_call(
        kern,
        out_shape=jax.ShapeDtypeStruct((Mp, Nout), out_dtype),
        grid_spec=pltpu.PrefetchScalarGridSpec(
            num_scalar_prefetch=0,
            grid=(nm,),
            in_specs=in_specs,
            out_specs=pl.BlockSpec((tm, Nout), lambda m: (m, 0))),
        compiler_params=pltpu.CompilerParams(
            dimension_semantics=("parallel",),
            vmem_limit_bytes=32 * 1024 * 1024),
    )(*operands)
    return out[:M] if Mp != M else out


# --------------------------------- XLA glue ----------------------------------

def im2col(x_nhwc, k, stride, pad):
    """k x k patches (tap-major, channel-minor) -> (N*Ho*Wo, k*k*C)."""
    N, H, W, C = x_nhwc.shape
    if pad:
        x_nhwc = jnp.pad(x_nhwc, ((0, 0), (pad, pad), (pad, pad), (0, 0)))
    Ho = (H + 2 * pad - k) // stride + 1
    Wo = (W + 2 * pad - k) // stride + 1
    cols = []
    for kh in range(k):
        for kw in range(k):
            cols.append(x_nhwc[:, kh:kh + stride * (Ho - 1) + 1:stride,
                               kw:kw + stride * (Wo - 1) + 1:stride, :])
    a = jnp.stack(cols, axis=3)                      # (N, Ho, Wo, k*k, C)
    return a.reshape(N * Ho * Wo, k * k * C), Ho, Wo


def im2col_2x2(x_nhwc):
    """2x2 stride-1 patches (tap-major, channel-minor) -> (N*(H-1)*(W-1), 4*C)."""
    N, H, W, C = x_nhwc.shape
    Ho, Wo = H - 1, W - 1
    cols = [x_nhwc[:, a:a + Ho, b:b + Wo, :] for a in range(2) for b in range(2)]
    a2 = jnp.stack(cols, axis=3)                     # (N, Ho, Wo, 4, C)
    return a2.reshape(N * Ho * Wo, 4 * C), Ho, Wo


def pixel_gather(z6, hin, win):
    """col2im for the Z-form ConvTranspose: y[n, 2t+r, 2s+c, :] = z6[n, t+r, s+c, r, c, :]."""
    n, c = z6.shape[0], z6.shape[-1]
    planes = [[z6[:, r:r + hin, cc:cc + win, r, cc, :] for cc in range(2)] for r in range(2)]
    p = jnp.stack([jnp.stack(row, axis=0) for row in planes], axis=0)   # (2, 2, N, hin, win, C)
    y = jnp.transpose(p, (2, 3, 0, 4, 1, 5))
    return y.reshape(n, 2 * hin, 2 * win, c)


def unet_forward(x_nchw, P, eps=1e-5):
    x = jnp.transpose(x_nchw, (0, 2, 3, 1)).astype(jnp.float32)          # NHWC internal
    N = x.shape[0]
    ngf = P["gamma3"].shape[0]
    out_nc = P["b4_raw"].shape[0]
    zb = lambda w: jnp.zeros((1, w.shape[1]), jnp.float32)

    # outermost down: Conv(in_nc -> ngf, k4 s2 p1, no bias)
    a1, H1, W1 = im2col(x.astype(jnp.bfloat16), 4, 2, 1)
    x1 = fused_mm(a1, P["w1"], zb(P["w1"]), out_dtype=jnp.bfloat16)
    x1 = x1[:, :ngf].reshape(N, H1, W1, ngf)                             # skip tensor (bf16)

    # innermost down: LeakyReLU(0.2) [fused pre-act] -> Conv(ngf -> 2ngf, k4 s2 p1, no bias)
    # innermost up's ReLU fused as the post-activation of the same matmul.
    a2, H2, W2 = im2col(x1, 4, 2, 1)
    y2 = fused_mm(a2, P["w2"], zb(P["w2"]), pre_act="leaky", post_act="relu",
                  out_dtype=jnp.bfloat16)
    y2 = y2[:, :2 * ngf].reshape(N, H2, W2, 2 * ngf)

    # innermost up: ConvTranspose(2ngf -> ngf, k4 s2 p1, no bias), Z-form:
    # one matmul over 2x2 windows of the pad-1 input emits all 4 sub-pixel phases
    # (N-dim = 4*ngf = 128, lane dense); col2im becomes a pure gather (no overlap-add).
    a3, Hp3, Wp3 = im2col_2x2(jnp.pad(y2, ((0, 0), (1, 1), (1, 1), (0, 0))))
    z3 = fused_mm(a3, P["w3"], zb(P["w3"]), out_dtype=jnp.float32)
    z3 = z3[:, :4 * ngf].reshape(N, Hp3, Wp3, 2, 2, ngf)
    y3 = pixel_gather(z3, H2, W2)                                        # pre-BN ConvT out (f32)

    # BatchNorm(ngf): training-mode batch stats (biased variance), affine; the normalize
    # itself is fused into layer 4's pre-activation below (no separate elementwise pass).
    mean = jnp.mean(y3, axis=(0, 1, 2))
    var = jnp.mean(jnp.square(y3 - mean), axis=(0, 1, 2))
    bn_scale = P["gamma3"] * jax.lax.rsqrt(var + eps)
    bn_shift = P["beta3"]
    y3c = y3 - mean                                  # pre-centered -> accurate bf16 operand

    # innermost skip + outermost up: cat([x1, BN(y3)]) -> ReLU -> ConvT(2ngf->out_nc,+bias) -> Tanh
    scale_ch = jnp.concatenate([jnp.ones((ngf,), jnp.float32), bn_scale])
    shift_ch = jnp.concatenate([jnp.zeros((ngf,), jnp.float32), bn_shift])
    h = jnp.concatenate([x1.astype(jnp.float32), y3c], axis=-1)
    # pad ring with -shift/scale so relu(scale*pad + shift) == 0 -> padding contributes nothing
    pad_val = -shift_ch / scale_ch
    h_ext = jnp.broadcast_to(pad_val, (N, H1 + 2, W1 + 2, 2 * ngf))
    h_ext = h_ext.at[:, 1:-1, 1:-1, :].set(h).astype(jnp.bfloat16)
    a4, Hp4, Wp4 = im2col_2x2(h_ext)
    scale_k = jnp.tile(scale_ch, 4)[None, :]
    shift_k = jnp.tile(shift_ch, 4)[None, :]
    z4 = fused_mm(a4, P["w4"], P["b4cols"], pre_scale=scale_k, pre_shift=shift_k,
                  pre_act="relu", post_act="tanh", out_dtype=jnp.float32)
    z4 = z4[:, :4 * out_nc].reshape(N, Hp4, Wp4, 2, 2, out_nc)
    out = pixel_gather(z4, H1, W1)                                       # (N, H, W, out_nc)
    return jnp.transpose(out, (0, 3, 1, 2))                              # back to NCHW


# --------------------------------- parameters ---------------------------------

def init_params(key, in_nc=3, out_nc=3, ngf=32):
    ks = jax.random.split(key, 7)
    w1 = 0.02 * jax.random.normal(ks[0], (ngf, in_nc, 4, 4), jnp.float32)       # Conv  OIHW
    w2 = 0.02 * jax.random.normal(ks[1], (2 * ngf, ngf, 4, 4), jnp.float32)     # Conv  OIHW
    w3 = 0.02 * jax.random.normal(ks[2], (2 * ngf, ngf, 4, 4), jnp.float32)     # ConvT (Cin,Cout,kh,kw)
    w4 = 0.02 * jax.random.normal(ks[3], (2 * ngf, out_nc, 4, 4), jnp.float32)  # ConvT (Cin,Cout,kh,kw)
    b4 = 0.02 * jax.random.normal(ks[4], (out_nc,), jnp.float32)
    gamma = 1.0 + 0.02 * jax.random.normal(ks[5], (ngf,), jnp.float32)
    beta = 0.02 * jax.random.normal(ks[6], (ngf,), jnp.float32)

    def conv_w2d(w):            # OIHW -> ((kh,kw,cin), cout padded to 128), bf16
        cout = w.shape[0]
        m = jnp.transpose(w, (2, 3, 1, 0)).reshape(-1, cout)
        return _pad_cols(m).astype(jnp.bfloat16)

    def convt_w_zform(wt):      # (Cin,Cout,4,4) -> Z-form ((a,b,ci),(r,c,co) padded), bf16
        idx = jnp.arange(2)
        k_idx = 3 - idx[None, :] - 2 * idx[:, None]      # [a, r] -> kernel tap index
        w = wt[:, :, k_idx, :]                           # (ci, co, a, r, kw)
        w = w[:, :, :, :, k_idx]                         # (ci, co, a, r, b, c)
        wbig = jnp.transpose(w, (2, 4, 0, 3, 5, 1)).reshape(4 * wt.shape[0], 4 * wt.shape[1])
        return _pad_cols(wbig).astype(jnp.bfloat16)

    b4cols = _pad_cols(jnp.tile(b4, 4).reshape(1, -1)).astype(jnp.float32)      # (r,c,co) order
    return dict(
        w1_raw=w1, w2_raw=w2, w3_raw=w3, w4_raw=w4, b4_raw=b4, gamma3=gamma, beta3=beta,
        w1=conv_w2d(w1), w2=conv_w2d(w2), w3=convt_w_zform(w3), w4=convt_w_zform(w4),
        b4cols=b4cols,
    )


# ------------------------------ pure-JAX reference -----------------------------

def reference_forward(x, P, eps=1e-5, slope=0.2):
    dn = ("NCHW", "OIHW", "NCHW")
    hi = jax.lax.Precision.HIGHEST

    def conv(t, w, s):
        return jax.lax.conv_general_dilated(t, w, (s, s), ((1, 1), (1, 1)),
                                            dimension_numbers=dn, precision=hi)

    def convT(t, wt):   # PyTorch ConvTranspose2d(k4, s2, p1)
        w_eq = jnp.transpose(jnp.flip(wt, (2, 3)), (1, 0, 2, 3))
        return jax.lax.conv_general_dilated(t, w_eq, (1, 1), ((2, 2), (2, 2)),
                                            lhs_dilation=(2, 2), dimension_numbers=dn,
                                            precision=hi)

    def bn(t, g, b):    # training-mode batch stats, affine
        m = jnp.mean(t, axis=(0, 2, 3), keepdims=True)
        v = jnp.mean((t - m) ** 2, axis=(0, 2, 3), keepdims=True)
        return (t - m) * jax.lax.rsqrt(v + eps) * g.reshape(1, -1, 1, 1) + b.reshape(1, -1, 1, 1)

    x1 = conv(x, P["w1_raw"], 2)
    y = jnp.where(x1 >= 0, x1, slope * x1)
    y = conv(y, P["w2_raw"], 2)
    y = jnp.maximum(y, 0.0)
    y = convT(y, P["w3_raw"])
    y = bn(y, P["gamma3"], P["beta3"])
    h = jnp.concatenate([x1, y], axis=1)
    h = jnp.maximum(h, 0.0)
    h = convT(h, P["w4_raw"]) + P["b4_raw"].reshape(1, -1, 1, 1)
    return jnp.tanh(h)


if __name__ == "__main__":
    key = jax.random.PRNGKey(0)
    key, kx = jax.random.split(key)
    x = jax.random.normal(kx, (2, 3, 16, 16), jnp.float32)   # NCHW like PyTorch
    params = init_params(key, in_nc=3, out_nc=3, ngf=32)

    out = jax.block_until_ready(jax.jit(unet_forward)(x, params))
    assert out.shape == (2, 3, 16, 16), out.shape

    ref = reference_forward(x, params)
    # bf16 MXU operands with f32 accumulation -> relaxed tolerance vs f32 reference.
    np.testing.assert_allclose(np.asarray(out), np.asarray(ref), rtol=2e-2, atol=2e-2)
    print("KERNEL_OK")
</pallas_src>

<mosaic_0001>
module attributes {stable_mosaic.version = 11 : i64} {
  func.func @_fused_mm_kernel(%arg0: i32, %arg1: memref<64x48xbf16, #tpu.memory_space<vmem>>, %arg2: memref<48x128xbf16, #tpu.memory_space<vmem>>, %arg3: memref<1x128xf32, #tpu.memory_space<vmem>>, %arg4: memref<64x128xbf16, #tpu.memory_space<vmem>>) attributes {dimension_semantics = [#tpu.dimension_semantics<parallel>], iteration_bounds = array<i64: 2>, scalar_prefetch = 0 : i64, scratch_operands = 0 : i64, tpu.core_type = #tpu.core_type<tc>, window_params = [{transform_indices = @transform_0, window_bounds = array<i64: 64, 48>}, {pipeline_mode = #tpu.pipeline_mode<synchronous>, transform_indices = @transform_1, window_bounds = array<i64: 48, 128>}, {pipeline_mode = #tpu.pipeline_mode<synchronous>, transform_indices = @transform_2, window_bounds = array<i64: 1, 128>}, {transform_indices = @transform_3, window_bounds = array<i64: 64, 128>}]} {
    %c0 = arith.constant 0 : index
    %c0_0 = arith.constant 0 : index
    %0 = vector.load %arg1[%c0, %c0_0] : memref<64x48xbf16, #tpu.memory_space<vmem>>, vector<64x48xbf16>
    %c0_1 = arith.constant 0 : index
    %c0_2 = arith.constant 0 : index
    %1 = vector.load %arg2[%c0_1, %c0_2] : memref<48x128xbf16, #tpu.memory_space<vmem>>, vector<48x128xbf16>
    %cst = arith.constant dense<0.000000e+00> : vector<64x128xf32>
    %2 = tpu.matmul %0, %1, %cst {dimension_numbers = #tpu.dot_dimension_numbers<[1], [0], [0], [1], [0, 0, 1, 1], [], []>} : vector<64x48xbf16>, vector<48x128xbf16>, vector<64x128xf32> -> vector<64x128xf32>
    %c0_3 = arith.constant 0 : index
    %c0_4 = arith.constant 0 : index
    %3 = vector.load %arg3[%c0_3, %c0_4] : memref<1x128xf32, #tpu.memory_space<vmem>>, vector<1x128xf32>
    %4 = vector.broadcast %3 : vector<1x128xf32> to vector<64x128xf32>
    %5 = arith.addf %2, %4 : vector<64x128xf32>
    %6 = arith.truncf %5 : vector<64x128xf32> to vector<64x128xbf16>
    %c0_5 = arith.constant 0 : index
    %c0_6 = arith.constant 0 : index
    %7 = vector.load %arg4[%c0_5, %c0_6] : memref<64x128xbf16, #tpu.memory_space<vmem>>, vector<64x128xbf16>
    tpu.vector_store %arg4[%c0_5, %c0_6], %6 {strides = array<i32>} : memref<64x128xbf16, #tpu.memory_space<vmem>>, vector<64x128xbf16>,
    return
  }
  func.func @transform_0(%arg0: i32) -> (i32, i32) {
    %c0_i32 = arith.constant 0 : i32
    %c0_i32_0 = arith.constant 0 : i32
    return %arg0, %c0_i32 : i32, i32
  }
  func.func @transform_1(%arg0: i32) -> (i32, i32) {
    %c0_i32 = arith.constant 0 : i32
    %c0_i32_0 = arith.constant 0 : i32
    %c0_i32_1 = arith.constant 0 : i32
    return %c0_i32, %c0_i32_0 : i32, i32
  }
  func.func @transform_2(%arg0: i32) -> (i32, i32) {
    %c0_i32 = arith.constant 0 : i32
    %c0_i32_0 = arith.constant 0 : i32
    %c0_i32_1 = arith.constant 0 : i32
    return %c0_i32, %c0_i32_0 : i32, i32
  }
  func.func @transform_3(%arg0: i32) -> (i32, i32) {
    %c0_i32 = arith.constant 0 : i32
    %c0_i32_0 = arith.constant 0 : i32
    return %arg0, %c0_i32 : i32, i32
  }
}

module attributes {stable_mosaic.version = 11 : i64} {
  func.func @_fused_mm_kernel(%arg0: i32, %arg1: memref<16x512xbf16, #tpu.memory_space<vmem>>, %arg2: memref<512x128xbf16, #tpu.memory_space<vmem>>, %arg3: memref<1x128xf32, #tpu.memory_space<vmem>>, %arg4: memref<16x128xbf16, #tpu.memory_space<vmem>>) attributes {dimension_semantics = [#tpu.dimension_semantics<parallel>], iteration_bounds = array<i64: 2>, scalar_prefetch = 0 : i64, scratch_operands = 0 : i64, tpu.core_type = #tpu.core_type<tc>, window_params = [{transform_indices = @transform_0, window_bounds = array<i64: 16, 512>}, {pipeline_mode = #tpu.pipeline_mode<synchronous>, transform_indices = @transform_1, window_bounds = array<i64: 512, 128>}, {pipeline_mode = #tpu.pipeline_mode<synchronous>, transform_indices = @transform_2, window_bounds = array<i64: 1, 128>}, {transform_indices = @transform_3, window_bounds = array<i64: 16, 128>}]} {
    %c0 = arith.constant 0 : index
    %c0_0 = arith.constant 0 : index
    %0 = vector.load %arg1[%c0, %c0_0] : memref<16x512xbf16, #tpu.memory_space<vmem>>, vector<16x512xbf16>
    %cst = arith.constant 0.000000e+00 : bf16
    %1 = vector.broadcast %cst : bf16 to vector<16x512xbf16>
    %2 = arith.cmpf oge, %0, %1 : vector<16x512xbf16>
    %cst_1 = arith.constant 2.001950e-01 : bf16
    %3 = vector.broadcast %cst_1 : bf16 to vector<16x512xbf16>
    %4 = arith.mulf %3, %0 : vector<16x512xbf16>
    %5 = arith.select %2, %0, %4 : vector<16x512xi1>, vector<16x512xbf16>
    %c0_2 = arith.constant 0 : index
    %c0_3 = arith.constant 0 : index
    %6 = vector.load %arg2[%c0_2, %c0_3] : memref<512x128xbf16, #tpu.memory_space<vmem>>, vector<512x128xbf16>
    %cst_4 = arith.constant dense<0.000000e+00> : vector<16x128xf32>
    %7 = tpu.matmul %5, %6, %cst_4 {dimension_numbers = #tpu.dot_dimension_numbers<[1], [0], [0], [1], [0, 0, 1, 1], [], []>} : vector<16x512xbf16>, vector<512x128xbf16>, vector<16x128xf32> -> vector<16x128xf32>
    %c0_5 = arith.constant 0 : index
    %c0_6 = arith.constant 0 : index
    %8 = vector.load %arg3[%c0_5, %c0_6] : memref<1x128xf32, #tpu.memory_space<vmem>>, vector<1x128xf32>
    %9 = vector.broadcast %8 : vector<1x128xf32> to vector<16x128xf32>
    %10 = arith.addf %7, %9 : vector<16x128xf32>
    %cst_7 = arith.constant 0.000000e+00 : f32
    %11 = vector.broadcast %cst_7 : f32 to vector<16x128xf32>
    %12 = arith.maximumf %10, %11 : vector<16x128xf32>
    %13 = arith.truncf %12 : vector<16x128xf32> to vector<16x128xbf16>
    %c0_8 = arith.constant 0 : index
    %c0_9 = arith.constant 0 : index
    %14 = vector.load %arg4[%c0_8, %c0_9] : memref<16x128xbf16, #tpu.memory_space<vmem>>, vector<16x128xbf16>
    tpu.vector_store %arg4[%c0_8, %c0_9], %13 {strides = array<i32>} : memref<16x128xbf16, #tpu.memory_space<vmem>>, vector<16x128xbf16>,
    return
  }
  func.func @transform_0(%arg0: i32) -> (i32, i32) {
    %c0_i32 = arith.constant 0 : i32
    %c0_i32_0 = arith.constant 0 : i32
    return %arg0, %c0_i32 : i32, i32
  }
  func.func @transform_1(%arg0: i32) -> (i32, i32) {
    %c0_i32 = arith.constant 0 : i32
    %c0_i32_0 = arith.constant 0 : i32
    %c0_i32_1 = arith.constant 0 : i32
    return %c0_i32, %c0_i32_0 : i32, i32
  }
  func.func @transform_2(%arg0: i32) -> (i32, i32) {
    %c0_i32 = arith.constant 0 : i32
    %c0_i32_0 = arith.constant 0 : i32
    %c0_i32_1 = arith.constant 0 : i32
    return %c0_i32, %c0_i32_0 : i32, i32
  }
  func.func @transform_3(%arg0: i32) -> (i32, i32) {
    %c0_i32 = arith.constant 0 : i32
    %c0_i32_0 = arith.constant 0 : i32
    return %arg0, %c0_i32 : i32, i32
  }
}

module attributes {stable_mosaic.version = 11 : i64} {
  func.func @_fused_mm_kernel(%arg0: i32, %arg1: memref<32x256xbf16, #tpu.memory_space<vmem>>, %arg2: memref<256x128xbf16, #tpu.memory_space<vmem>>, %arg3: memref<1x128xf32, #tpu.memory_space<vmem>>, %arg4: memref<32x128xf32, #tpu.memory_space<vmem>>) attributes {dimension_semantics = [#tpu.dimension_semantics<parallel>], iteration_bounds = array<i64: 2>, scalar_prefetch = 0 : i64, scratch_operands = 0 : i64, tpu.core_type = #tpu.core_type<tc>, window_params = [{transform_indices = @transform_0, window_bounds = array<i64: 32, 256>}, {pipeline_mode = #tpu.pipeline_mode<synchronous>, transform_indices = @transform_1, window_bounds = array<i64: 256, 128>}, {pipeline_mode = #tpu.pipeline_mode<synchronous>, transform_indices = @transform_2, window_bounds = array<i64: 1, 128>}, {transform_indices = @transform_3, window_bounds = array<i64: 32, 128>}]} {
    %c0 = arith.constant 0 : index
    %c0_0 = arith.constant 0 : index
    %0 = vector.load %arg1[%c0, %c0_0] : memref<32x256xbf16, #tpu.memory_space<vmem>>, vector<32x256xbf16>
    %c0_1 = arith.constant 0 : index
    %c0_2 = arith.constant 0 : index
    %1 = vector.load %arg2[%c0_1, %c0_2] : memref<256x128xbf16, #tpu.memory_space<vmem>>, vector<256x128xbf16>
    %cst = arith.constant dense<0.000000e+00> : vector<32x128xf32>
    %2 = tpu.matmul %0, %1, %cst {dimension_numbers = #tpu.dot_dimension_numbers<[1], [0], [0], [1], [0, 0, 1, 1], [], []>} : vector<32x256xbf16>, vector<256x128xbf16>, vector<32x128xf32> -> vector<32x128xf32>
    %c0_3 = arith.constant 0 : index
    %c0_4 = arith.constant 0 : index
    %3 = vector.load %arg3[%c0_3, %c0_4] : memref<1x128xf32, #tpu.memory_space<vmem>>, vector<1x128xf32>
    %4 = vector.broadcast %3 : vector<1x128xf32> to vector<32x128xf32>
    %5 = arith.addf %2, %4 : vector<32x128xf32>
    %c0_5 = arith.constant 0 : index
    %c0_6 = arith.constant 0 : index
    %6 = vector.load %arg4[%c0_5, %c0_6] : memref<32x128xf32, #tpu.memory_space<vmem>>, vector<32x128xf32>
    tpu.vector_store %arg4[%c0_5, %c0_6], %5 {strides = array<i32>} : memref<32x128xf32, #tpu.memory_space<vmem>>, vector<32x128xf32>,
    return
  }
  func.func @transform_0(%arg0: i32) -> (i32, i32) {
    %c0_i32 = arith.constant 0 : i32
    %c0_i32_0 = arith.constant 0 : i32
    return %arg0, %c0_i32 : i32, i32
  }
  func.func @transform_1(%arg0: i32) -> (i32, i32) {
    %c0_i32 = arith.constant 0 : i32
    %c0_i32_0 = arith.constant 0 : i32
    %c0_i32_1 = arith.constant 0 : i32
    return %c0_i32, %c0_i32_0 : i32, i32
  }
  func.func @transform_2(%arg0: i32) -> (i32, i32) {
    %c0_i32 = arith.constant 0 : i32
    %c0_i32_0 = arith.constant 0 : i32
    %c0_i32_1 = arith.constant 0 : i32
    return %c0_i32, %c0_i32_0 : i32, i32
  }
  func.func @transform_3(%arg0: i32) -> (i32, i32) {
    %c0_i32 = arith.constant 0 : i32
    %c0_i32_0 = arith.constant 0 : i32
    return %arg0, %c0_i32 : i32, i32
  }
}

module attributes {stable_mosaic.version = 11 : i64} {
  func.func @_fused_mm_kernel(%arg0: i32, %arg1: memref<88x256xbf16, #tpu.memory_space<vmem>>, %arg2: memref<256x128xbf16, #tpu.memory_space<vmem>>, %arg3: memref<1x128xf32, #tpu.memory_space<vmem>>, %arg4: memref<1x256xf32, #tpu.memory_space<vmem>>, %arg5: memref<1x256xf32, #tpu.memory_space<vmem>>, %arg6: memref<88x128xf32, #tpu.memory_space<vmem>>) attributes {dimension_semantics = [#tpu.dimension_semantics<parallel>], iteration_bounds = array<i64: 2>, scalar_prefetch = 0 : i64, scratch_operands = 0 : i64, tpu.core_type = #tpu.core_type<tc>, window_params = [{transform_indices = @transform_0, window_bounds = array<i64: 88, 256>}, {pipeline_mode = #tpu.pipeline_mode<synchronous>, transform_indices = @transform_1, window_bounds = array<i64: 256, 128>}, {pipeline_mode = #tpu.pipeline_mode<synchronous>, transform_indices = @transform_2, window_bounds = array<i64: 1, 128>}, {pipeline_mode = #tpu.pipeline_mode<synchronous>, transform_indices = @transform_3, window_bounds = array<i64: 1, 256>}, {pipeline_mode = #tpu.pipeline_mode<synchronous>, transform_indices = @transform_4, window_bounds = array<i64: 1, 256>}, {transform_indices = @transform_5, window_bounds = array<i64: 88, 128>}]} {
    %c0 = arith.constant 0 : index
    %c0_0 = arith.constant 0 : index
    %0 = vector.load %arg1[%c0, %c0_0] : memref<88x256xbf16, #tpu.memory_space<vmem>>, vector<88x256xbf16>
    %1 = arith.extf %0 : vector<88x256xbf16> to vector<88x256xf32>
    %c0_1 = arith.constant 0 : index
    %c0_2 = arith.constant 0 : index
    %2 = vector.load %arg4[%c0_1, %c0_2] : memref<1x256xf32, #tpu.memory_space<vmem>>, vector<1x256xf32>
    %3 = vector.broadcast %2 : vector<1x256xf32> to vector<88x256xf32>
    %4 = arith.mulf %1, %3 : vector<88x256xf32>
    %c0_3 = arith.constant 0 : index
    %c0_4 = arith.constant 0 : index
    %5 = vector.load %arg5[%c0_3, %c0_4] : memref<1x256xf32, #tpu.memory_space<vmem>>, vector<1x256xf32>
    %6 = vector.broadcast %5 : vector<1x256xf32> to vector<88x256xf32>
    %7 = arith.addf %4, %6 : vector<88x256xf32>
    %cst = arith.constant 0.000000e+00 : f32
    %8 = vector.broadcast %cst : f32 to vector<88x256xf32>
    %9 = arith.maximumf %7, %8 : vector<88x256xf32>
    %10 = arith.truncf %9 : vector<88x256xf32> to vector<88x256xbf16>
    %c0_5 = arith.constant 0 : index
    %c0_6 = arith.constant 0 : index
    %11 = vector.load %arg2[%c0_5, %c0_6] : memref<256x128xbf16, #tpu.memory_space<vmem>>, vector<256x128xbf16>
    %cst_7 = arith.constant dense<0.000000e+00> : vector<88x128xf32>
    %12 = tpu.matmul %10, %11, %cst_7 {dimension_numbers = #tpu.dot_dimension_numbers<[1], [0], [0], [1], [0, 0, 1, 1], [], []>} : vector<88x256xbf16>, vector<256x128xbf16>, vector<88x128xf32> -> vector<88x128xf32>
    %c0_8 = arith.constant 0 : index
    %c0_9 = arith.constant 0 : index
    %13 = vector.load %arg3[%c0_8, %c0_9] : memref<1x128xf32, #tpu.memory_space<vmem>>, vector<1x128xf32>
    %14 = vector.broadcast %13 : vector<1x128xf32> to vector<88x128xf32>
    %15 = arith.addf %12, %14 : vector<88x128xf32>
    %16 = math.tanh %15 : vector<88x128xf32>
    %c0_10 = arith.constant 0 : index
    %c0_11 = arith.constant 0 : index
    %17 = vector.load %arg6[%c0_10, %c0_11] : memref<88x128xf32, #tpu.memory_space<vmem>>, vector<88x128xf32>
    tpu.vector_store %arg6[%c0_10, %c0_11], %16 {strides = array<i32>} : memref<88x128xf32, #tpu.memory_space<vmem>>, vector<88x128xf32>,
    return
  }
  func.func @transform_0(%arg0: i32) -> (i32, i32) {
    %c0_i32 = arith.constant 0 : i32
    %c0_i32_0 = arith.constant 0 : i32
    return %arg0, %c0_i32 : i32, i32
  }
  func.func @transform_1(%arg0: i32) -> (i32, i32) {
    %c0_i32 = arith.constant 0 : i32
    %c0_i32_0 = arith.constant 0 : i32
    %c0_i32_1 = arith.constant 0 : i32
    return %c0_i32, %c0_i32_0 : i32, i32
  }
  func.func @transform_2(%arg0: i32) -> (i32, i32) {
    %c0_i32 = arith.constant 0 : i32
    %c0_i32_0 = arith.constant 0 : i32
    %c0_i32_1 = arith.constant 0 : i32
    return %c0_i32, %c0_i32_0 : i32, i32
  }
  func.func @transform_3(%arg0: i32) -> (i32, i32) {
    %c0_i32 = arith.constant 0 : i32
    %c0_i32_0 = arith.constant 0 : i32
    %c0_i32_1 = arith.constant 0 : i32
    return %c0_i32, %c0_i32_0 : i32, i32
  }
  func.func @transform_4(%arg0: i32) -> (i32, i32) {
    %c0_i32 = arith.constant 0 : i32
    %c0_i32_0 = arith.constant 0 : i32
    %c0_i32_1 = arith.constant 0 : i32
    return %c0_i32, %c0_i32_0 : i32, i32
  }
  func.func @transform_5(%arg0: i32) -> (i32, i32) {
    %c0_i32 = arith.constant 0 : i32
    %c0_i32_0 = arith.constant 0 : i32
    return %arg0, %c0_i32 : i32, i32
  }
}

</mosaic_0001>

<bundles_post_ra>
// kernel: unet_forward.4
= control target key start
LH: loop header
LB: loop body
LE: loop exit
PB: predicated region body
PF: predicated region fallthrough
CT: control target
= control target key end

     0   :  { %s540_s12 = smov 0   ;;  %s576_s0 = inlined_call_operand.vmem [shape: bf16[128,48], index: 0, kind: input, shape index: {}]   ;;  %s577_s1 = inlined_call_operand.vmem [shape: bf16[48,128], index: 1, kind: input, shape index: {}]   ;;  %s578_s2 = inlined_call_operand.vmem [shape: f32[1,128], index: 2, kind: input, shape index: {}]   ;;  %s579_s3 = inlined_call_operand.vmem [shape: bf16[128,128], index: 3, kind: output, shape index: {}]  }
   0x1 LB: > { %s408_s13 = sadd.s32 4294967295, %s518_s12   ;;  %p412_p0 = scmp.ge.s32.totalorder %s518_s12, 1  ;;  %s518_s12 = sphi %s540_s12, %s13_s12  }
   0x2   : > { %p138_p1 = scmp.lt.s32.totalorder %s518_s12, 3 }
   0x4   : > { %p139_p2 = pnand %p412_p0, %p138_p1 }
   0x5   : > { %v505_v0 = vld [vmem:[%s577_s1] sm:$0xff] (!%p139_p2)   ;;  %s413_s16 = sshll.u32 (!%p139_p2), %s408_s13, 3  ;;  %v506_v1 = vld [vmem:[%s577_s1 + $0x8] sm:$0xff] (!%p139_p2)   ;;  %v507_v2 = vld [vmem:[%s577_s1 + $0x10] sm:$0xff] (!%p139_p2)   ;;  %vm234_vm0 = vcmask (!%p139_p2), 392192  }
   0x6   : > { %142 = sbr.rel (%p139_p2) target bundleno = 238 (0xee), region = 32  ;;  %p163_p3 = scmp.lt.s32.totalorder (!%p139_p2), %s413_s16, 15  ;;  %477 = vmatprep.subr.bf16.mxu0 (!%p139_p2), %v505_v0  ;;  %491 = vmatprep.subr.bf16.mxu1 (!%p139_p2), %v505_v0  ;;  %v417_v8 = vld [vmem:[%s578_s2] ss:$0 sm:$0xff] (!%p139_p2) }
   0x7   : > { %478 = vmatpush3.bf16.msra.mxu0 (!%p139_p2), %v505_v0  ;;  %494 = vmatpush3.bf16.msra.mxu1 (!%p139_p2), %v505_v0 }
   0x8   : > { %479 = vmatprep.subr.bf16.mxu0 (!%p139_p2), %v506_v1  ;;  %492 = vmatprep.subr.bf16.mxu1 (!%p139_p2), %v506_v1 }
   0xb   : > { %480 = vmatpush3.bf16.msra.mxu0 (!%p139_p2), %v506_v1  ;;  %495 = vmatpush3.bf16.msra.mxu1 (!%p139_p2), %v506_v1 }
   0xc   : > { %481 = vmatprep.subr.bf16.mxu0 (!%p139_p2), %v507_v2  ;;  %493 = vmatprep.subr.bf16.mxu1 (!%p139_p2), %v507_v2 }
   0xd   : > { %s581_s16 = smov (!%p163_p3, %s413_s16), 15 }
   0xe   : > { %s414_s21 = sshll.u32 %s581_s16, 2 }
   0xf   : > { %s166_s24 = scalar_lea.vmem %s576_s0, %s414_s21  ;;  %482 = vmatpush3.bf16.msra.mxu0 %v507_v2  ;;  %496 = vmatpush3.bf16.msra.mxu1 %v507_v2  ;;  %s172_s29 = scalar_lea.vmem %s579_s3, %s414_s21 }
  0x10   : > { %v508_v3 = vld [vmem:[%s166_s24] sm:$0xff]   ;;  %v509_v4 = vld [vmem:[%s166_s24 + $0x10] sm:$0xff]   ;;  %v510_v5 = vld [vmem:[%s166_s24 + $0x8] sm:$0xff]  }
  0x11   : > { %483 = vmatprep.mubr.msk.bf16.mxu0 %vm234_vm0, %v508_v3  ;;  %487 = vmatprep.mubr.msk.bf16.mxu1 %vm234_vm0, %v509_v4  ;;  %v511_v6 = vld [vmem:[%s166_s24 + $0x18] sm:$0xff]  }
  0x12   : > { %484 = vmatmul.mubr.msk.bf16.vlgmr.msra.gmra.mrb[0].mxu0 %vm234_vm0, %v510_v5  ;;  %488 = vmatmul.mubr.msk.bf16.vlgmr.msra.gmra.mrb[0].mxu1 %vm234_vm0, %v511_v6 }
  0xe5   : > { %v485_v7 = vpop.f32.mrb[0].mxu0  ;;  %v489_v9 = vpop.f32.mrb[0].mxu1 }
  0xe6   : > { %v281_v10 = vpop.f32.mrb[1].mxu0  ;;  %v297_v11 = vpop.f32.mrb[1].mxu1  ;;  %v290_v14 = vadd.f32 %v485_v7, %v417_v8  ;;  %v306_v15 = vadd.f32 %v489_v9, %v417_v8 }
  0xe7   : > { %v486_v12 = vpop.f32.mrb[2].mxu0  ;;  %v490_v13 = vpop.f32.mrb[2].mxu1  ;;  %v282_v20 = vadd.f32 %v417_v8, %v281_v10  ;;  %v298_v21 = vadd.f32 %v417_v8, %v297_v11 }
  0xe8   : > { %v293_v16 = vadd.f32 %v486_v12, %v417_v8  ;;  %v309_v17 = vadd.f32 %v490_v13, %v417_v8  ;;  %v284_v18 = vpop.f32.mrb[3].mxu0  ;;  %v300_v19 = vpop.f32.mrb[3].mxu1 }
  0xe9   : > { %v285_v22 = vadd.f32 %v417_v8, %v284_v18  ;;  %v301_v23 = vadd.f32 %v417_v8, %v300_v19 }
  0xea   : > { %v455_v24 = vpack.c.bf16 %v293_v16, %v290_v14  ;;  %v465_v25 = vpack.c.bf16 %v309_v17, %v306_v15 }
  0xeb   : > { %v450_v26 = vpack.c.bf16 %v285_v22, %v282_v20  ;;  %v460_v27 = vpack.c.bf16 %v301_v23, %v298_v21 }
  0xec   : > { %467 = vst [vmem:[%s172_s29 + $0x8] sm:$0xff] %v455_v24   ;;  %469 = vst [vmem:[%s172_s29 + $0x18] sm:$0xff] %v465_v25  }
  0xed   : > { %451 = vst [vmem:[%s172_s29] sm:$0xff] %v450_v26   ;;  %468 = vst [vmem:[%s172_s29 + $0x10] sm:$0xff] %v460_v27  }
  0xee PF: > { %s13_s12 = sadd.s32 1, %s518_s12  }
  0xef   : > { %p10_p4 = scmp.ge.s32.totalorder %s13_s12, 4  }
  0xf1   :  { %12 = sbr.rel (!%p10_p4) target bundleno = 1 (0x1), region = 62 }

// kernel: unet_forward.5
= control target key start
LH: loop header
LB: loop body
LE: loop exit
PB: predicated region body
PF: predicated region fallthrough
CT: control target
= control target key end

     0   :  { %s799_s12 = smov 0   ;;  %s921_s0 = inlined_call_operand.vmem [shape: bf16[32,512], index: 0, kind: input, shape index: {}]   ;;  %s922_s1 = inlined_call_operand.vmem [shape: bf16[512,128], index: 1, kind: input, shape index: {}]   ;;  %s923_s2 = inlined_call_operand.vmem [shape: f32[1,128], index: 2, kind: input, shape index: {}]   ;;  %s924_s3 = inlined_call_operand.vmem [shape: bf16[32,128], index: 3, kind: output, shape index: {}]  }
   0x1 LB: > { %s628_s13 = sadd.s32 4294967295, %s777_s12   ;;  %p632_p0 = scmp.ge.s32.totalorder %s777_s12, 1  ;;  %s777_s12 = sphi %s799_s12, %s13_s12  }
   0x2   : > { %p139_p1 = scmp.lt.s32.totalorder %s777_s12, 3 }
   0x4   : > { %p140_p2 = pnand %p632_p0, %p139_p1 }
   0x5   : > { %v739_v0 = vld [vmem:[%s922_s1 + $0x40] sm:$0xff] (!%p140_p2)   ;;  %v743_v4 = vld [vmem:[%s922_s1 + $0x48] sm:$0xff] (!%p140_p2)   ;;  %v747_v8 = vld [vmem:[%s922_s1 + $0x50] sm:$0xff] (!%p140_p2)   ;;  %s633_s21 = sshll.u32 (!%p140_p2), %s628_s13, 1 }
   0x6   : > { %143 = sbr.rel (%p140_p2) target bundleno = 265 (0x109), region = 32  ;;  %v740_v1 = vld [vmem:[%s922_s1 + $0xc0] sm:$0xff] (!%p140_p2)   ;;  %687 = vmatprep.subr.bf16.mxu0 (!%p140_p2), %v739_v0  ;;  %v744_v5 = vld [vmem:[%s922_s1 + $0xc8] sm:$0xff] (!%p140_p2)   ;;  %v748_v9 = vld [vmem:[%s922_s1 + $0xd0] sm:$0xff] (!%p140_p2)   ;;  %p165_p3 = scmp.lt.s32.totalorder (!%p140_p2), %s633_s21, 3 }
   0x7   : > { %v741_v2 = vld [vmem:[%s922_s1] sm:$0xff] (!%p140_p2)   ;;  %709 = vmatprep.subr.bf16.mxu1 (!%p140_p2), %v740_v1  ;;  %v745_v6 = vld [vmem:[%s922_s1 + $0x8] sm:$0xff] (!%p140_p2)   ;;  %v749_v10 = vld [vmem:[%s922_s1 + $0x10] sm:$0xff] (!%p140_p2)  }
   0x8   : > { %v742_v3 = vld [vmem:[%s922_s1 + $0x80] sm:$0xff] (!%p140_p2)   ;;  %688 = vmatpush3.bf16.msra.mxu0 (!%p140_p2), %v741_v2  ;;  %v746_v7 = vld [vmem:[%s922_s1 + $0x88] sm:$0xff] (!%p140_p2)   ;;  %v750_v11 = vld [vmem:[%s922_s1 + $0x90] sm:$0xff] (!%p140_p2)  }
   0x9   : > { %710 = vmatpush3.bf16.msra.mxu1 (!%p140_p2), %v742_v3  ;;  %689 = vmatprep.subr.bf16.mxu0 (!%p140_p2), %v743_v4  ;;  %v751_v12 = vld [vmem:[%s922_s1 + $0x58] sm:$0xff] (!%p140_p2)   ;;  %v755_v16 = vld [vmem:[%s922_s1 + $0x60] sm:$0xff] (!%p140_p2)   ;;  %v759_v20 = vld [vmem:[%s922_s1 + $0x68] sm:$0xff] (!%p140_p2)  }
   0xa   : > { %711 = vmatprep.subr.bf16.mxu1 (!%p140_p2), %v744_v5  ;;  %v752_v13 = vld [vmem:[%s922_s1 + $0xd8] sm:$0xff] (!%p140_p2)   ;;  %v756_v17 = vld [vmem:[%s922_s1 + $0xe0] sm:$0xff] (!%p140_p2)   ;;  %v760_v21 = vld [vmem:[%s922_s1 + $0xe8] sm:$0xff] (!%p140_p2)  }
   0xb   : > { %v753_v14 = vld [vmem:[%s922_s1 + $0x18] sm:$0xff] (!%p140_p2)   ;;  %v757_v18 = vld [vmem:[%s922_s1 + $0x20] sm:$0xff] (!%p140_p2)   ;;  %v761_v22 = vld [vmem:[%s922_s1 + $0x28] sm:$0xff] (!%p140_p2)  }
   0xc   : > { %690 = vmatpush3.bf16.msra.mxu0 (!%p140_p2), %v745_v6  ;;  %v754_v15 = vld [vmem:[%s922_s1 + $0x98] sm:$0xff] (!%p140_p2)   ;;  %v758_v19 = vld [vmem:[%s922_s1 + $0xa0] sm:$0xff] (!%p140_p2)   ;;  %v762_v23 = vld [vmem:[%s922_s1 + $0xa8] sm:$0xff] (!%p140_p2)  }
   0xd   : > { %712 = vmatpush3.bf16.msra.mxu1 %v746_v7  ;;  %691 = vmatprep.subr.bf16.mxu0 %v747_v8  ;;  %s926_s21 = smov (!%p165_p3, %s633_s21), 3  ;;  %v763_v24 = vld [vmem:[%s922_s1 + $0x70] sm:$0xff]   ;;  %v767_v28 = vld [vmem:[%s922_s1 + $0x78] sm:$0xff]   ;;  %v638_v49 = vld [vmem:[%s923_s2] ss:$0 sm:$0xff] }
   0xe   : > { %713 = vmatprep.subr.bf16.mxu1 %v748_v9  ;;  %v764_v25 = vld [vmem:[%s922_s1 + $0xf0] sm:$0xff]   ;;  %s679_s18 = sshll.u32 %s926_s21, 4  ;;  %v768_v29 = vld [vmem:[%s922_s1 + $0xf8] sm:$0xff]   ;;  %s637_s7 = sshll.u32 %s926_s21, 2 }
   0xf   : > { %v765_v26 = vld [vmem:[%s922_s1 + $0x30] sm:$0xff]   ;;  %s169_s28 = scalar_lea.vmem %s921_s0, %s679_s18  ;;  %v769_v30 = vld [vmem:[%s922_s1 + $0x38] sm:$0xff]   ;;  %s175_s10 = scalar_lea.vmem %s924_s3, %s637_s7 }
  0x10   : > { %692 = vmatpush3.bf16.msra.mxu0 %v749_v10  ;;  %v766_v27 = vld [vmem:[%s922_s1 + $0xb0] sm:$0xff]   ;;  %v770_v31 = vld [vmem:[%s922_s1 + $0xb8] sm:$0xff]   ;;  %v179_v32 = vld [vmem:[%s169_s28] sm:$0xff] }
  0x11   : > { %714 = vmatpush3.bf16.msra.mxu1 %v750_v11  ;;  %693 = vmatprep.subr.bf16.mxu0 %v751_v12  ;;  %v181_v33 = vld [vmem:[%s169_s28 + $0x10] sm:$0xff]  ;;  %v180_v34 = vld [vmem:[%s169_s28 + $0x8] sm:$0xff]  ;;  %vm183_vm0 = vcmp.ge.bf16.partialorder %v179_v32, 0  ;;  %v187_v35 = vmul.bf16 1045249613, %v179_v32  ;;  %v182_v37 = vld [vmem:[%s169_s28 + $0x18] sm:$0xff] }
  0x12   : > { %715 = vmatprep.subr.bf16.mxu1 %v752_v13  ;;  %vm185_vm1 = vcmp.ge.bf16.partialorder %v181_v33, 0  ;;  %v189_v36 = vmul.bf16 1045249613, %v181_v33  ;;  %vm184_vm2 = vcmp.ge.bf16.partialorder %v180_v34, 0  ;;  %v188_v38 = vmul.bf16 1045249613, %v180_v34 }
  0x13   : > { %v191_v39 = vsel %vm183_vm0, %v179_v32, %v187_v35  ;;  %vm186_vm3 = vcmp.ge.bf16.partialorder %v182_v37, 0  ;;  %v190_v41 = vmul.bf16 1045249613, %v182_v37 }
  0x14   : > { %694 = vmatpush3.bf16.msra.mxu0 %v753_v14  ;;  %v193_v40 = vsel %vm185_vm1, %v181_v33, %v189_v36  ;;  %v192_v44 = vsel %vm184_vm2, %v180_v34, %v188_v38 }
  0x15   : > { %716 = vmatpush3.bf16.msra.mxu1 %v754_v15  ;;  %695 = vmatprep.subr.bf16.mxu0 %v755_v16  ;;  %v639_v42 = vcombine.low %v191_v39, %v193_v40  ;;  %v640_v43 = vcombine.high %v191_v39, %v193_v40  ;;  %v194_v45 = vsel %vm186_vm3, %v182_v37, %v190_v41 }
  0x16   : > { %717 = vmatprep.subr.bf16.mxu1 %v756_v17  ;;  %v641_v46 = vcombine.low %v192_v44, %v194_v45  ;;  %v642_v47 = vcombine.high %v192_v44, %v194_v45 }
  0x17   : > { %510 = vmatprep.mubr.bf16.mxu0 %v640_v43 }
  0x18   : > { %696 = vmatpush3.bf16.msra.mxu0 %v757_v18  ;;  %551 = vmatprep.mubr.bf16.mxu1 %v642_v47 }
  0x19   : > { %718 = vmatpush3.bf16.msra.mxu1 %v758_v19  ;;  %697 = vmatprep.subr.bf16.mxu0 %v759_v20 }
  0x1a   : > { %719 = vmatprep.subr.bf16.mxu1 %v760_v21 }
  0x1c   : > { %698 = vmatpush3.bf16.msra.mxu0 %v761_v22 }
  0x1d   : > { %720 = vmatpush3.bf16.msra.mxu1 %v762_v23  ;;  %699 = vmatprep.subr.bf16.mxu0 %v763_v24 }
  0x1e   : > { %721 = vmatprep.subr.bf16.mxu1 %v764_v25 }
  0x20   : > { %700 = vmatpush3.bf16.msra.mxu0 %v765_v26 }
  0x21   : > { %722 = vmatpush3.bf16.msra.mxu1 %v766_v27  ;;  %701 = vmatprep.subr.bf16.mxu0 %v767_v28 }
  0x22   : > { %723 = vmatprep.subr.bf16.mxu1 %v768_v29 }
  0x24   : > { %702 = vmatpush3.bf16.msra.mxu0 %v769_v30 }
  0x25   : > { %724 = vmatpush3.bf16.msra.mxu1 %v770_v31 }
  0x27   : > { %511 = vmatmul.mubr.bf16.vlgmr.msra.gmra.mrb[0].mxu0 %v639_v42 }
  0x28   : > { %552 = vmatmul.mubr.bf16.vlgmr.msra.gmra.mrb[0].mxu1 %v641_v46 }
  0xfa   : > { %v703_v48 = vpop.f32.mrb[0].mxu0 }
  0xfb   : > { %v704_v50 = vpop.f32.mrb[1].mxu0  ;;  %v725_v51 = vpop.f32.mrb[0].mxu1 }
  0xfc   : > { %v705_v52 = vadd.f32 %v704_v50, %v703_v48  ;;  %v706_v53 = vpop.f32.mrb[2].mxu0  ;;  %v726_v54 = vpop.f32.mrb[1].mxu1 }
  0xfd   : > { %v707_v55 = vpop.f32.mrb[3].mxu0  ;;  %v727_v57 = vadd.f32 %v726_v54, %v725_v51  ;;  %v728_v58 = vpop.f32.mrb[2].mxu1 }
  0xfe   : > { %v513_v56 = vadd.f32 %v705_v52, %v638_v49  ;;  %v708_v59 = vadd.f32 %v707_v55, %v706_v53  ;;  %v729_v60 = vpop.f32.mrb[3].mxu1 }
  0xff   : > { %v730_v63 = vadd.f32 %v729_v60, %v728_v58 }
 0x100   : > { %v554_v61 = vadd.f32 %v727_v57, %v513_v56  ;;  %v516_v62 = vadd.f32 %v708_v59, %v638_v49 }
 0x102   : > { %v557_v0 = vadd.f32 %v730_v63, %v516_v62  ;;  %v560_v1 = vmax.f32 %v554_v61, 0.0 }
 0x104   : > { %v561_v2 = vmax.f32 %v557_v0, 0.0 }
 0x106   : > { %v685_v3 = vpack.c.bf16 %v561_v2, %v560_v1 }
 0x108   : > { %686 = vst [vmem:[%s175_s10] sm:$0xff] %v685_v3  }
 0x109 PF: > { %s13_s12 = sadd.s32 1, %s777_s12  }
 0x10a   : > { %p10_p4 = scmp.ge.s32.totalorder %s13_s12, 4  }
 0x10c   :  { %12 = sbr.rel (!%p10_p4) target bundleno = 1 (0x1), region = 62 }

// kernel: unet_forward.6
= control target key start
LH: loop header
LB: loop body
LE: loop exit
PB: predicated region body
PF: predicated region fallthrough
CT: control target
= control target key end

     0   :  { %s582_s12 = smov 0   ;;  %s657_s0 = inlined_call_operand.vmem [shape: bf16[64,256], index: 0, kind: input, shape index: {}]   ;;  %s658_s1 = inlined_call_operand.vmem [shape: bf16[256,128], index: 1, kind: input, shape index: {}]   ;;  %s659_s2 = inlined_call_operand.vmem [shape: f32[1,128], index: 2, kind: input, shape index: {}]   ;;  %s660_s3 = inlined_call_operand.vmem [shape: f32[64,128], index: 3, kind: output, shape index: {}]  }
   0x1 LB: > { %s446_s13 = sadd.s32 4294967295, %s560_s12   ;;  %p450_p0 = scmp.ge.s32.totalorder %s560_s12, 1  ;;  %s560_s12 = sphi %s582_s12, %s13_s12  }
   0x2   : > { %p139_p1 = scmp.lt.s32.totalorder %s560_s12, 3 }
   0x4   : > { %p140_p2 = pnand %p450_p0, %p139_p1 }
   0x5   : > { %v532_v0 = vld [vmem:[%s658_s1 + $0x40] sm:$0xff] (!%p140_p2)   ;;  %s451_s16 = sshll.u32 (!%p140_p2), %s446_s13, 2  ;;  %v534_v2 = vld [vmem:[%s658_s1 + $0x48] sm:$0xff] (!%p140_p2)   ;;  %v536_v4 = vld [vmem:[%s658_s1 + $0x50] sm:$0xff] (!%p140_p2)  }
   0x6   : > { %143 = sbr.rel (%p140_p2) target bundleno = 258 (0x102), region = 32  ;;  %v533_v1 = vld [vmem:[%s658_s1] sm:$0xff] (!%p140_p2)   ;;  %480 = vmatprep.subr.bf16.mxu0 (!%p140_p2), %v532_v0  ;;  %508 = vmatprep.subr.bf16.mxu1 (!%p140_p2), %v532_v0  ;;  %v535_v3 = vld [vmem:[%s658_s1 + $0x8] sm:$0xff] (!%p140_p2)   ;;  %p165_p3 = scmp.lt.s32.totalorder (!%p140_p2), %s451_s16, 7  ;;  %v537_v5 = vld [vmem:[%s658_s1 + $0x10] sm:$0xff] (!%p140_p2)  }
   0x7   : > { %481 = vmatpush3.bf16.msra.mxu0 (!%p140_p2), %v533_v1  ;;  %516 = vmatpush3.bf16.msra.mxu1 (!%p140_p2), %v533_v1  ;;  %v538_v6 = vld [vmem:[%s658_s1 + $0x58] sm:$0xff] (!%p140_p2)   ;;  %v540_v8 = vld [vmem:[%s658_s1 + $0x60] sm:$0xff] (!%p140_p2)   ;;  %v542_v10 = vld [vmem:[%s658_s1 + $0x68] sm:$0xff] (!%p140_p2)  }
   0x8   : > { %482 = vmatprep.subr.bf16.mxu0 (!%p140_p2), %v534_v2  ;;  %509 = vmatprep.subr.bf16.mxu1 (!%p140_p2), %v534_v2  ;;  %v539_v7 = vld [vmem:[%s658_s1 + $0x18] sm:$0xff] (!%p140_p2)   ;;  %v541_v9 = vld [vmem:[%s658_s1 + $0x20] sm:$0xff] (!%p140_p2)   ;;  %v543_v13 = vld [vmem:[%s658_s1 + $0x28] sm:$0xff] (!%p140_p2)  }
   0x9   : > { %v544_v14 = vld [vmem:[%s658_s1 + $0x70] sm:$0xff] (!%p140_p2)   ;;  %v546_v16 = vld [vmem:[%s658_s1 + $0x78] sm:$0xff] (!%p140_p2)   ;;  %v456_v22 = vld [vmem:[%s659_s2] ss:$0 sm:$0xff] (!%p140_p2) }
   0xa   : > { %v545_v15 = vld [vmem:[%s658_s1 + $0x30] sm:$0xff] (!%p140_p2)   ;;  %v547_v17 = vld [vmem:[%s658_s1 + $0x38] sm:$0xff] (!%p140_p2)  }
   0xb   : > { %483 = vmatpush3.bf16.msra.mxu0 (!%p140_p2), %v535_v3  ;;  %517 = vmatpush3.bf16.msra.mxu1 (!%p140_p2), %v535_v3 }
   0xc   : > { %484 = vmatprep.subr.bf16.mxu0 (!%p140_p2), %v536_v4  ;;  %510 = vmatprep.subr.bf16.mxu1 (!%p140_p2), %v536_v4 }
   0xd   : > { %s662_s16 = smov (!%p165_p3, %s451_s16), 7 }
   0xe   : > { %s479_s4 = sshll.u32 %s662_s16, 3 }
   0xf   : > { %485 = vmatpush3.bf16.msra.mxu0 %v537_v5  ;;  %518 = vmatpush3.bf16.msra.mxu1 %v537_v5  ;;  %s169_s9 = scalar_lea.vmem %s657_s0, %s479_s4  ;;  %s175_s30 = scalar_lea.vmem %s660_s3, %s479_s4 }
  0x10   : > { %486 = vmatprep.subr.bf16.mxu0 %v538_v6  ;;  %511 = vmatprep.subr.bf16.mxu1 %v538_v6  ;;  %v550_v11 = vld [vmem:[%s169_s9 + $0x4] ss:$8 sps:$4 sm:$0xff]   ;;  %v553_v12 = vld [vmem:[%s169_s9 + $0x14] ss:$8 sps:$4 sm:$0xff]   ;;  %v548_v18 = vld [vmem:[%s169_s9] ss:$8 sps:$4 sm:$0xff]  }
  0x11   : > { %369 = vmatprep.mubr.bf16.mxu0 %v550_v11  ;;  %377 = vmatprep.mubr.bf16.mxu1 %v553_v12  ;;  %v551_v19 = vld [vmem:[%s169_s9 + $0x10] ss:$8 sps:$4 sm:$0xff]  }
  0x13   : > { %487 = vmatpush3.bf16.msra.mxu0 %v539_v7  ;;  %519 = vmatpush3.bf16.msra.mxu1 %v539_v7 }
  0x14   : > { %488 = vmatprep.subr.bf16.mxu0 %v540_v8  ;;  %512 = vmatprep.subr.bf16.mxu1 %v540_v8 }
  0x17   : > { %489 = vmatpush3.bf16.msra.mxu0 %v541_v9  ;;  %520 = vmatpush3.bf16.msra.mxu1 %v541_v9 }
  0x18   : > { %490 = vmatprep.subr.bf16.mxu0 %v542_v10  ;;  %513 = vmatprep.subr.bf16.mxu1 %v542_v10 }
  0x1b   : > { %491 = vmatpush3.bf16.msra.mxu0 %v543_v13  ;;  %521 = vmatpush3.bf16.msra.mxu1 %v543_v13 }
  0x1c   : > { %492 = vmatprep.subr.bf16.mxu0 %v544_v14  ;;  %514 = vmatprep.subr.bf16.mxu1 %v544_v14 }
  0x1f   : > { %493 = vmatpush3.bf16.msra.mxu0 %v545_v15  ;;  %522 = vmatpush3.bf16.msra.mxu1 %v545_v15 }
  0x20   : > { %494 = vmatprep.subr.bf16.mxu0 %v546_v16  ;;  %515 = vmatprep.subr.bf16.mxu1 %v546_v16 }
  0x23   : > { %495 = vmatpush3.bf16.msra.mxu0 %v547_v17  ;;  %523 = vmatpush3.bf16.msra.mxu1 %v547_v17 }
  0x26   : > { %370 = vmatmul.mubr.bf16.vlgmr.msra.gmra.mrb[0].mxu0 %v548_v18  ;;  %378 = vmatmul.mubr.bf16.vlgmr.msra.gmra.mrb[0].mxu1 %v551_v19 }
  0xf9   : > { %v496_v20 = vpop.f32.mrb[0].mxu0  ;;  %v502_v21 = vpop.f32.mrb[0].mxu1 }
  0xfa   : > { %v497_v23 = vpop.f32.mrb[1].mxu0  ;;  %v503_v24 = vpop.f32.mrb[1].mxu1 }
  0xfb   : > { %v498_v25 = vadd.f32 %v497_v23, %v496_v20  ;;  %v504_v26 = vadd.f32 %v503_v24, %v502_v21  ;;  %v499_v27 = vpop.f32.mrb[2].mxu0  ;;  %v505_v28 = vpop.f32.mrb[2].mxu1 }
  0xfc   : > { %v500_v29 = vpop.f32.mrb[3].mxu0  ;;  %v506_v30 = vpop.f32.mrb[3].mxu1 }
  0xfd   : > { %v372_v31 = vadd.f32 %v498_v25, %v456_v22  ;;  %v501_v32 = vadd.f32 %v500_v29, %v499_v27  ;;  %v507_v33 = vadd.f32 %v506_v30, %v505_v28  ;;  %v380_v35 = vadd.f32 %v504_v26, %v456_v22 }
  0xff   : > { %386 = vst [vmem:[%s175_s30] sm:$0xff] %v372_v31  ;;  %v375_v34 = vadd.f32 %v501_v32, %v456_v22  ;;  %v383_v36 = vadd.f32 %v507_v33, %v456_v22  ;;  %388 = vst [vmem:[%s175_s30 + $0x10] sm:$0xff] %v380_v35 }
 0x101   : > { %387 = vst [vmem:[%s175_s30 + $0x8] sm:$0xff] %v375_v34  ;;  %389 = vst [vmem:[%s175_s30 + $0x18] sm:$0xff] %v383_v36 }
 0x102 PF: > { %s13_s12 = sadd.s32 1, %s560_s12  }
 0x103   : > { %p10_p4 = scmp.ge.s32.totalorder %s13_s12, 4  }
 0x105   :  { %12 = sbr.rel (!%p10_p4) target bundleno = 1 (0x1), region = 62 }

// kernel: tile.13
= control target key start
LH: loop header
LB: loop body
LE: loop exit
PB: predicated region body
PF: predicated region fallthrough
CT: control target
= control target key end

     0   :  { %s22_s0 = inlined_call_operand.vmem [shape: f32[64], index: 0, kind: input, shape index: {}]   ;;  %s23_s1 = inlined_call_operand.vmem [shape: f32[4,64], index: 1, kind: output, shape index: {}]  }
   0x1   :  { %v4_v0 = vld [vmem:[%s22_s0] ss:$0 sm:$0xff] }
   0x2   :  { %5 = vst [vmem:[%s23_s1] sm:$0xf] %v4_v0 }

// kernel: tile.14
= control target key start
LH: loop header
LB: loop body
LE: loop exit
PB: predicated region body
PF: predicated region fallthrough
CT: control target
= control target key end

     0   :  { %s6_s8 = smov 3  ;;  %vm8_vm0 = vcmask 523264   ;;  %s30_s9 = smov 64   ;;  %vm15_vm1 = vcmask 1048064   ;;  %s50_s0 = inlined_call_operand.vmem [shape: f32[4,64], index: 0, kind: input, shape index: {}]   ;;  %s51_s1 = inlined_call_operand.vmem [shape: f32[1,256], index: 1, kind: output, shape index: {}]  }
   0x1   :  { %v4_v0 = vld [vmem:[%s50_s0] sm:$0xf]  ;;  %s11_s0 = smov 3 }
   0x2   :  { %5 = vst [vmem:[#allocation1] sm:$0xf] %v4_v0 }
   0x9   :  { %v12_v1 = vld [vmem:[#allocation1 + $0x1] ss:$2 sm:%s11_s0]   ;;  %v7_v2 = vld [vmem:[#allocation1] ss:$2 sm:%s6_s8]  }
   0xa   :  { %13 = vrot.lane.b32.xlu0 %v12_v1, %s30_s9  ;;  %9 = vst.msk [vmem:[#allocation0] ss:$8 sm:$0x3] %vm8_vm0, %v7_v2  }
  0x7c   :  { %v14_v3 = vpop.permute.xlu0 %13  }
  0x7d   :  { %16 = vst.msk [vmem:[#allocation0] ss:$8 sm:$0x3] %vm15_vm1, %v14_v3  }
  0x84   :  { %v20_v4 = vld [vmem:[#allocation0] sm:$0x1]  ;;  %v24_v5 = vld [vmem:[#allocation0 + $0x8] sm:$0x1] }
  0x85   :  { %22 = vst [vmem:[%s51_s1] sm:$0x1] %v20_v4  ;;  %28 = vst [vmem:[%s51_s1 + $0x1] sm:$0x1] %v24_v5 }

// kernel: unet_forward.7
= control target key start
LH: loop header
LB: loop body
LE: loop exit
PB: predicated region body
PF: predicated region fallthrough
CT: control target
= control target key end

     0   :  { %s840_s18 = smov 0   ;;  %s1003_s0 = inlined_call_operand.vmem [shape: bf16[176,256], index: 0, kind: input, shape index: {}]   ;;  %s1004_s1 = inlined_call_operand.vmem [shape: bf16[256,128], index: 1, kind: input, shape index: {}]   ;;  %s1005_s2 = inlined_call_operand.vmem [shape: f32[1,128], index: 2, kind: input, shape index: {}]   ;;  %s1006_s3 = inlined_call_operand.vmem [shape: f32[1,256], index: 3, kind: input, shape index: {}]   ;;  %s1007_s4 = inlined_call_operand.vmem [shape: f32[1,256], index: 4, kind: input, shape index: {}]   ;;  %s1008_s5 = inlined_call_operand.vmem [shape: f32[176,128], index: 5, kind: output, shape index: {}]  }
   0x1 LB: > { %s660_s19 = sadd.s32 4294967295, %s808_s18   ;;  %p664_p0 = scmp.ge.s32.totalorder %s808_s18, 1  ;;  %s808_s18 = sphi %s840_s18, %s15_s18  }
   0x2   : > { %p189_p1 = scmp.lt.s32.totalorder %s808_s18, 3 }
   0x4   : > { %p190_p2 = pnand %p664_p0, %p189_p1 }
   0x5   : > { %v764_v0 = vld [vmem:[%s1004_s1 + $0x40] sm:$0xff] (!%p190_p2)   ;;  %s218_s22 = smul.u32 (!%p190_p2), 11, %s660_s19  ;;  %v766_v2 = vld [vmem:[%s1004_s1 + $0x48] sm:$0xff] (!%p190_p2)   ;;  %v768_v4 = vld [vmem:[%s1004_s1 + $0x50] sm:$0xff] (!%p190_p2)   ;;  %v267_v5 = vlaneseq (!%p190_p2) }
   0x6   : > { %193 = sbr.rel (%p190_p2) target bundleno = 287 (0x11f), region = 40  ;;  %v765_v1 = vld [vmem:[%s1004_s1] sm:$0xff] (!%p190_p2)   ;;  %688 = vmatprep.subr.bf16.mxu0 (!%p190_p2), %v764_v0  ;;  %740 = vmatprep.subr.bf16.mxu1 (!%p190_p2), %v764_v0  ;;  %v767_v3 = vld [vmem:[%s1004_s1 + $0x8] sm:$0xff] (!%p190_p2)   ;;  %v769_v6 = vld [vmem:[%s1004_s1 + $0x10] sm:$0xff] (!%p190_p2)  }
   0x7   : > { %p219_p3 = scmp.lt.s32.totalorder (!%p190_p2), %s218_s22, 21  ;;  %689 = vmatpush3.bf16.msra.mxu0 (!%p190_p2), %v765_v1  ;;  %748 = vmatpush3.bf16.msra.mxu1 (!%p190_p2), %v765_v1  ;;  %v770_v7 = vld [vmem:[%s1004_s1 + $0x58] sm:$0xff] (!%p190_p2)   ;;  %v268_v8 = vshrl.u32 (!%p190_p2), %v267_v5, 7  ;;  %v772_v10 = vld [vmem:[%s1004_s1 + $0x60] sm:$0xff] (!%p190_p2)   ;;  %v774_v14 = vld [vmem:[%s1004_s1 + $0x68] sm:$0xff] (!%p190_p2)  }
   0x8   : > { %690 = vmatprep.subr.bf16.mxu0 (!%p190_p2), %v766_v2  ;;  %741 = vmatprep.subr.bf16.mxu1 (!%p190_p2), %v766_v2  ;;  %v771_v9 = vld [vmem:[%s1004_s1 + $0x18] sm:$0xff] (!%p190_p2)   ;;  %v773_v12 = vld [vmem:[%s1004_s1 + $0x20] sm:$0xff] (!%p190_p2)   ;;  %v775_v30 = vld [vmem:[%s1004_s1 + $0x28] sm:$0xff] (!%p190_p2)  }
   0x9   : > { %v269_v11 = vsub.s32 (!%p190_p2), 0, %v268_v8  ;;  %v273_v13 = vsub.s32 (!%p190_p2), 1, %v268_v8  ;;  %v265_v17 = vld [vmem:[%s1006_s3] sm:$0x3] (!%p190_p2)  ;;  %v776_v35 = vld [vmem:[%s1004_s1 + $0x70] sm:$0xff] (!%p190_p2)   ;;  %v778_v54 = vld [vmem:[%s1004_s1 + $0x78] sm:$0xff] (!%p190_p2)  }
   0xa   : > { %v299_v22 = vld [vmem:[%s1007_s4] sm:$0x3] (!%p190_p2)  ;;  %v777_v49 = vld [vmem:[%s1004_s1 + $0x30] sm:$0xff] (!%p190_p2)   ;;  %v779_v5 = vld [vmem:[%s1004_s1 + $0x38] sm:$0xff] (!%p190_p2)  }
   0xb   : > { %691 = vmatpush3.bf16.msra.mxu0 (!%p190_p2), %v767_v3  ;;  %749 = vmatpush3.bf16.msra.mxu1 (!%p190_p2), %v767_v3  ;;  %v901_v25 = vrot.slane (!%p190_p2), %v265_v17, %v269_v11  ;;  %v903_v26 = vrot.slane (!%p190_p2), %v265_v17, %v273_v13  ;;  %v905_v27 = vrot.slane (!%p190_p2), %v299_v22, %v269_v11 }
   0xc   : > { %692 = vmatprep.subr.bf16.mxu0 (!%p190_p2), %v768_v4  ;;  %742 = vmatprep.subr.bf16.mxu1 (!%p190_p2), %v768_v4  ;;  %v907_v28 = vrot.slane (!%p190_p2), %v299_v22, %v273_v13 }
   0xd   : > { %s1010_s22 = smov (!%p219_p3, %s218_s22), 21 }
   0xe   : > { %s687_s10 = sshll.u32 %s1010_s22, 3 }
   0xf   : > { %693 = vmatpush3.bf16.msra.mxu0 %v769_v6  ;;  %750 = vmatpush3.bf16.msra.mxu1 %v769_v6  ;;  %s883_s17 = scalar_lea.vmem %s1003_s0, %s687_s10  ;;  %s987_s19 = scalar_lea.vmem %s1008_s5, %s687_s10 }
  0x10   : > { %694 = vmatprep.subr.bf16.mxu0 %v770_v7  ;;  %743 = vmatprep.subr.bf16.mxu1 %v770_v7  ;;  %v232_v15 = vld [vmem:[%s883_s17] sm:$0xff]  ;;  %v233_v16 = vld [vmem:[%s883_s17 + $0x8] sm:$0xff]  ;;  %v238_v23 = vld [vmem:[%s883_s17 + $0x30] sm:$0xff] }
  0x11   : > { %v243_v18 = vunpack.c.l.bf16 %v232_v15  ;;  %v244_v19 = vunpack.c.h.bf16 %v232_v15  ;;  %v245_v20 = vunpack.c.l.bf16 %v233_v16  ;;  %v246_v21 = vunpack.c.h.bf16 %v233_v16  ;;  %v239_v24 = vld [vmem:[%s883_s17 + $0x38] sm:$0xff]  ;;  %v910_v29 = vld [vmem:[%s883_s17 + $0x10] sm:$0xff]  ;;  %v240_v59 = vld [vmem:[%s883_s17 + $0x40] sm:$0xff] }
  0x12   : > { %v255_v31 = vunpack.c.l.bf16 %v238_v23  ;;  %v256_v32 = vunpack.c.h.bf16 %v238_v23  ;;  %v257_v33 = vunpack.c.l.bf16 %v239_v24  ;;  %v258_v34 = vunpack.c.h.bf16 %v239_v24  ;;  %v235_v39 = vld [vmem:[%s883_s17 + $0x18] sm:$0xff]  ;;  %v241_v0 = vld [vmem:[%s883_s17 + $0x48] sm:$0xff] }
  0x13   : > { %695 = vmatpush3.bf16.msra.mxu0 %v771_v9  ;;  %751 = vmatpush3.bf16.msra.mxu1 %v771_v9  ;;  %v278_v36 = vmul.f32 %v903_v26, %v244_v19  ;;  %v280_v37 = vmul.f32 %v903_v26, %v246_v21  ;;  %v277_v38 = vmul.f32 %v901_v25, %v243_v18  ;;  %v248_v40 = vunpack.c.h.bf16 %v910_v29  ;;  %v236_v18 = vld [vmem:[%s883_s17 + $0x20] sm:$0xff] }
  0x14   : > { %696 = vmatprep.subr.bf16.mxu0 %v772_v10  ;;  %744 = vmatprep.subr.bf16.mxu1 %v772_v10  ;;  %v290_v41 = vmul.f32 %v903_v26, %v256_v32  ;;  %v292_v42 = vmul.f32 %v903_v26, %v258_v34  ;;  %v279_v43 = vmul.f32 %v901_v25, %v245_v20  ;;  %v250_v53 = vunpack.c.h.bf16 %v235_v39 }
  0x15   : > { %v289_v44 = vmul.f32 %v901_v25, %v255_v31  ;;  %v312_v45 = vadd.f32 %v907_v28, %v278_v36  ;;  %v314_v46 = vadd.f32 %v907_v28, %v280_v37  ;;  %v311_v47 = vadd.f32 %v905_v27, %v277_v38  ;;  %v237_v31 = vld [vmem:[%s883_s17 + $0x28] sm:$0xff]  ;;  %v242_v36 = vld [vmem:[%s883_s17 + $0x50] sm:$0xff] }
  0x16   : > { %v291_v48 = vmul.f32 %v901_v25, %v257_v33  ;;  %v324_v50 = vadd.f32 %v907_v28, %v290_v41  ;;  %v326_v51 = vadd.f32 %v907_v28, %v292_v42  ;;  %v313_v52 = vadd.f32 %v905_v27, %v279_v43 }
  0x17   : > { %697 = vmatpush3.bf16.msra.mxu0 %v773_v12  ;;  %752 = vmatpush3.bf16.msra.mxu1 %v773_v12  ;;  %v334_v55 = vmax.f32 %v312_v45, 0.0  ;;  %v336_v56 = vmax.f32 %v314_v46, 0.0  ;;  %v333_v57 = vmax.f32 %v311_v47, 0.0  ;;  %v323_v58 = vadd.f32 %v905_v27, %v289_v44 }
  0x18   : > { %698 = vmatprep.subr.bf16.mxu0 %v774_v14  ;;  %745 = vmatprep.subr.bf16.mxu1 %v774_v14  ;;  %v346_v60 = vmax.f32 %v324_v50, 0.0  ;;  %v348_v61 = vmax.f32 %v326_v51, 0.0  ;;  %v335_v62 = vmax.f32 %v313_v52, 0.0  ;;  %v325_v63 = vadd.f32 %v905_v27, %v291_v48 }
  0x19   : > { %v356_v1 = vpack.c.bf16 %v336_v56, %v334_v55  ;;  %v345_v2 = vmax.f32 %v323_v58, 0.0  ;;  %v282_v3 = vmul.f32 %v903_v26, %v248_v40  ;;  %v284_v4 = vmul.f32 %v903_v26, %v250_v53 }
  0x1a   : > { %v362_v6 = vpack.c.bf16 %v348_v61, %v346_v60  ;;  %v355_v7 = vpack.c.bf16 %v335_v62, %v333_v57  ;;  %v347_v8 = vmax.f32 %v325_v63, 0.0  ;;  %v260_v9 = vunpack.c.h.bf16 %v240_v59 }
  0x1b   : > { %699 = vmatpush3.bf16.msra.mxu0 %v775_v30  ;;  %753 = vmatpush3.bf16.msra.mxu1 %v775_v30  ;;  %v316_v10 = vadd.f32 %v907_v28, %v282_v3  ;;  %v318_v11 = vadd.f32 %v907_v28, %v284_v4  ;;  %v262_v12 = vunpack.c.h.bf16 %v241_v0  ;;  %v247_v13 = vunpack.c.l.bf16 %v910_v29 }
  0x1c   : > { %700 = vmatprep.subr.bf16.mxu0 %v776_v35  ;;  %746 = vmatprep.subr.bf16.mxu1 %v776_v35  ;;  %v361_v14 = vpack.c.bf16 %v347_v8, %v345_v2  ;;  %v294_v15 = vmul.f32 %v903_v26, %v260_v9  ;;  %v249_v16 = vunpack.c.l.bf16 %v235_v39  ;;  %v259_v17 = vunpack.c.l.bf16 %v240_v59 }
  0x1d   : > { %534 = vmatprep.mubr.bf16.mxu0 %v356_v1  ;;  %558 = vmatprep.mubr.bf16.mxu1 %v362_v6  ;;  %v338_v19 = vmax.f32 %v316_v10, 0.0  ;;  %v340_v20 = vmax.f32 %v318_v11, 0.0  ;;  %v296_v21 = vmul.f32 %v903_v26, %v262_v12  ;;  %v281_v22 = vmul.f32 %v901_v25, %v247_v13  ;;  %v668_v12 = vld [vmem:[%s1005_s2] ss:$0 sm:$0xff] }
  0x1e   : > { %v328_v23 = vadd.f32 %v907_v28, %v294_v15  ;;  %v283_v24 = vmul.f32 %v901_v25, %v249_v16  ;;  %v261_v29 = vunpack.c.l.bf16 %v241_v0  ;;  %v293_v30 = vmul.f32 %v901_v25, %v259_v17 }
  0x1f   : > { %701 = vmatpush3.bf16.msra.mxu0 %v777_v49  ;;  %754 = vmatpush3.bf16.msra.mxu1 %v777_v49  ;;  %v358_v32 = vpack.c.bf16 %v340_v20, %v338_v19  ;;  %v330_v33 = vadd.f32 %v907_v28, %v296_v21  ;;  %v315_v34 = vadd.f32 %v905_v27, %v281_v22  ;;  %v252_v35 = vunpack.c.h.bf16 %v236_v18 }
  0x20   : > { %702 = vmatprep.subr.bf16.mxu0 %v778_v54  ;;  %747 = vmatprep.subr.bf16.mxu1 %v778_v54  ;;  %v350_v37 = vmax.f32 %v328_v23, 0.0  ;;  %v317_v38 = vadd.f32 %v905_v27, %v283_v24  ;;  %v295_v39 = vmul.f32 %v901_v25, %v261_v29  ;;  %v327_v40 = vadd.f32 %v905_v27, %v293_v30 }
  0x21   : > { %v352_v41 = vmax.f32 %v330_v33, 0.0  ;;  %v337_v42 = vmax.f32 %v315_v34, 0.0  ;;  %v254_v43 = vunpack.c.h.bf16 %v237_v31  ;;  %v286_v44 = vmul.f32 %v903_v26, %v252_v35 }
  0x22   : > { %v339_v45 = vmax.f32 %v317_v38, 0.0  ;;  %v329_v46 = vadd.f32 %v905_v27, %v295_v39  ;;  %v349_v47 = vmax.f32 %v327_v40, 0.0  ;;  %v264_v48 = vunpack.c.h.bf16 %v242_v36 }
  0x23   : > { %703 = vmatpush3.bf16.msra.mxu0 %v779_v5  ;;  %755 = vmatpush3.bf16.msra.mxu1 %v779_v5  ;;  %v364_v49 = vpack.c.bf16 %v352_v41, %v350_v37  ;;  %v288_v50 = vmul.f32 %v903_v26, %v254_v43  ;;  %v320_v51 = vadd.f32 %v907_v28, %v286_v44  ;;  %v251_v52 = vunpack.c.l.bf16 %v236_v18 }
  0x24   : > { %v357_v53 = vpack.c.bf16 %v339_v45, %v337_v42  ;;  %v351_v54 = vmax.f32 %v329_v46, 0.0  ;;  %v298_v55 = vmul.f32 %v903_v26, %v264_v48  ;;  %v253_v56 = vunpack.c.l.bf16 %v237_v31 }
  0x25   : > { %v322_v57 = vadd.f32 %v907_v28, %v288_v50  ;;  %v342_v58 = vmax.f32 %v320_v51, 0.0  ;;  %v285_v59 = vmul.f32 %v901_v25, %v251_v52  ;;  %v263_v60 = vunpack.c.l.bf16 %v242_v36 }
  0x26   : > { %535 = vmatmul.mubr.bf16.vlgmr.msra.gmra.mrb[0].mxu0 %v355_v7  ;;  %559 = vmatmul.mubr.bf16.vlgmr.msra.gmra.mrb[0].mxu1 %v361_v14  ;;  %v363_v61 = vpack.c.bf16 %v351_v54, %v349_v47  ;;  %v332_v62 = vadd.f32 %v907_v28, %v298_v55  ;;  %v287_v63 = vmul.f32 %v901_v25, %v253_v56 }
  0x27   : > { %542 = vmatprep.mubr.bf16.mxu0 %v358_v32  ;;  %566 = vmatprep.mubr.bf16.mxu1 %v364_v49  ;;  %v344_v0 = vmax.f32 %v322_v57, 0.0  ;;  %v319_v1 = vadd.f32 %v905_v27, %v285_v59  ;;  %v297_v2 = vmul.f32 %v901_v25, %v263_v60 }
  0x28   : > { %v354_v3 = vmax.f32 %v332_v62, 0.0  ;;  %v321_v26 = vadd.f32 %v905_v27, %v287_v63 }
  0x29   : > { %v360_v4 = vpack.c.bf16 %v344_v0, %v342_v58  ;;  %v341_v5 = vmax.f32 %v319_v1, 0.0  ;;  %v331_v6 = vadd.f32 %v905_v27, %v297_v2 }
  0x2a   : > { %v366_v7 = vpack.c.bf16 %v354_v3, %v354_v3  ;;  %v343_v8 = vmax.f32 %v321_v26, 0.0 }
  0x2b   : > { %v353_v28 = vmax.f32 %v331_v6, 0.0 }
  0x2c   : > { %v359_v9 = vpack.c.bf16 %v343_v8, %v341_v5 }
  0x2d   : > { %v365_v10 = vpack.c.bf16 %v353_v28, %v353_v28 }
  0x2e   : > { %543 = vmatmul.mubr.bf16.gmra.mrb[4].mxu0 %v357_v53  ;;  %567 = vmatmul.mubr.bf16.gmra.mrb[4].mxu1 %v363_v61 }
  0x2f   : > { %550 = vmatprep.mubr.bf16.mxu0 %v360_v4  ;;  %574 = vmatprep.mubr.bf16.mxu1 %v366_v7 }
  0x36   : > { %551 = vmatmul.mubr.bf16.gmra.mrb[8].mxu0 %v359_v9  ;;  %575 = vmatmul.mubr.bf16.gmra.mrb[8].mxu1 %v365_v10 }
  0xf9   : > { %v704_v11 = vpop.f32.mrb[0].mxu0  ;;  %v722_v25 = vpop.f32.mrb[0].mxu1 }
  0xfa   : > { %v705_v13 = vpop.f32.mrb[1].mxu0  ;;  %v723_v14 = vpop.f32.mrb[1].mxu1 }
  0xfb   : > { %v706_v15 = vadd.f32 %v705_v13, %v704_v11  ;;  %v724_v16 = vadd.f32 %v723_v14, %v722_v25  ;;  %v707_v27 = vpop.f32.mrb[2].mxu0  ;;  %v725_v17 = vpop.f32.mrb[2].mxu1 }
  0xfc   : > { %v708_v18 = vpop.f32.mrb[3].mxu0  ;;  %v726_v19 = vpop.f32.mrb[3].mxu1 }
  0xfd   : > { %v537_v20 = vadd.f32 %v706_v15, %v668_v12  ;;  %v561_v21 = vadd.f32 %v724_v16, %v668_v12  ;;  %v709_v22 = vadd.f32 %v708_v18, %v707_v27  ;;  %v727_v23 = vadd.f32 %v726_v19, %v725_v17 }
  0xff   : > { %780 = vtanh.f32 %v537_v20  ;;  %v540_v24 = vadd.f32 %v709_v22, %v668_v12  ;;  %v564_v29 = vadd.f32 %v727_v23, %v668_v12 }
 0x100   : > { %782 = vtanh.f32 %v561_v21 }
 0x101   : > { %784 = vtanh.f32 %v540_v24  ;;  %v710_v30 = vpop.f32.mrb[4].mxu0  ;;  %v728_v31 = vpop.f32.mrb[4].mxu1 }
 0x102   : > { %786 = vtanh.f32 %v564_v29  ;;  %v711_v32 = vpop.f32.mrb[5].mxu0  ;;  %v729_v33 = vpop.f32.mrb[5].mxu1 }
 0x103   : > { %v712_v34 = vadd.f32 %v711_v32, %v710_v30  ;;  %v730_v35 = vadd.f32 %v729_v33, %v728_v31  ;;  %v713_v36 = vpop.f32.mrb[6].mxu0  ;;  %v731_v37 = vpop.f32.mrb[6].mxu1 }
 0x104   : > { %v714_v38 = vpop.f32.mrb[7].mxu0  ;;  %v732_v39 = vpop.f32.mrb[7].mxu1 }
 0x105   : > { %v545_v40 = vadd.f32 %v712_v34, %v668_v12  ;;  %v569_v41 = vadd.f32 %v730_v35, %v668_v12  ;;  %v715_v42 = vadd.f32 %v714_v38, %v713_v36  ;;  %v733_v43 = vadd.f32 %v732_v39, %v731_v37 }
 0x107   : > { %788 = vtanh.f32 %v545_v40  ;;  %v548_v44 = vadd.f32 %v715_v42, %v668_v12  ;;  %v572_v45 = vadd.f32 %v733_v43, %v668_v12 }
 0x108   : > { %790 = vtanh.f32 %v569_v41 }
 0x109   : > { %v781_v46 = vpop.eup %780  ;;  %792 = vtanh.f32 %v548_v44  ;;  %v716_v47 = vpop.f32.mrb[8].mxu0 }
 0x10a   : > { %v734_v48 = vpop.f32.mrb[8].mxu1  ;;  %v783_v49 = vpop.eup %782  ;;  %593 = vst [vmem:[%s987_s19] sm:$0xff] %v781_v46  ;;  %794 = vtanh.f32 %v572_v45 }
 0x10b   : > { %v717_v50 = vpop.f32.mrb[9].mxu0  ;;  %v735_v51 = vpop.f32.mrb[9].mxu1  ;;  %599 = vst [vmem:[%s987_s19 + $0x30] sm:$0xff] %v783_v49 }
 0x10c   : > { %v785_v52 = vpop.eup %784  ;;  %v718_v53 = vadd.f32 %v717_v50, %v716_v47  ;;  %v736_v54 = vadd.f32 %v735_v51, %v734_v48  ;;  %v719_v55 = vpop.f32.mrb[10].mxu0 }
 0x10d   : > { %v737_v56 = vpop.f32.mrb[10].mxu1  ;;  %v787_v57 = vpop.eup %786  ;;  %594 = vst [vmem:[%s987_s19 + $0x8] sm:$0xff] %v785_v52 }
 0x10e   : > { %v720_v58 = vpop.f32.mrb[11].mxu0  ;;  %v738_v59 = vpop.f32.mrb[11].mxu1  ;;  %600 = vst [vmem:[%s987_s19 + $0x38] sm:$0xff] %v787_v57  ;;  %v553_v60 = vadd.f32 %v718_v53, %v668_v12  ;;  %v577_v61 = vadd.f32 %v736_v54, %v668_v12 }
 0x10f   : > { %v721_v62 = vadd.f32 %v720_v58, %v719_v55 }
 0x110   : > { %796 = vtanh.f32 %v553_v60 }
 0x111   : > { %v556_v63 = vadd.f32 %v721_v62, %v668_v12  ;;  %798 = vtanh.f32 %v577_v61  ;;  %v789_v0 = vpop.eup %788 }
 0x112   : > { %v791_v1 = vpop.eup %790  ;;  %595 = vst [vmem:[%s987_s19 + $0x10] sm:$0xff] %v789_v0 }
 0x113   : > { %800 = vtanh.f32 %v556_v63  ;;  %v793_v2 = vpop.eup %792  ;;  %601 = vst [vmem:[%s987_s19 + $0x40] sm:$0xff] %v791_v1 }
 0x114   : > { %v795_v3 = vpop.eup %794  ;;  %596 = vst [vmem:[%s987_s19 + $0x18] sm:$0xff] %v793_v2 }
 0x115   : > { %602 = vst [vmem:[%s987_s19 + $0x48] sm:$0xff] %v795_v3 }
 0x11a   : > { %v797_v26 = vpop.eup %796 }
 0x11b   : > { %v799_v4 = vpop.eup %798  ;;  %597 = vst [vmem:[%s987_s19 + $0x20] sm:$0xff] %v797_v26 }
 0x11c   : > { %603 = vst [vmem:[%s987_s19 + $0x50] sm:$0xff] %v799_v4 }
 0x11d   : > { %v801_v5 = vpop.eup %800 }
 0x11e   : > { %598 = vst [vmem:[%s987_s19 + $0x28] sm:$0xff] %v801_v5 }
 0x11f PF: > { %s15_s18 = sadd.s32 1, %s808_s18  }
 0x120   : > { %p12_p4 = scmp.ge.s32.totalorder %s15_s18, 4  }
 0x122   :  { %14 = sbr.rel (!%p12_p4) target bundleno = 1 (0x1), region = 70 }

</bundles_post_ra>
